<compile_context>
chip_gen: v5e
topology: v5e:2x2
jax: 0.10.0
libtpu: 0.0.40
codegen_flags: <defaults>
</compile_context>

<pallas_src>
import functools
from typing import NamedTuple, Optional

import jax
import jax.numpy as jnp
from jax.experimental import pallas as pl
from jax.experimental.pallas import tpu as pltpu


class ModelOutputs(NamedTuple):
    forward_out: jnp.ndarray                  # (B, C) logits (native dtype)
    perturbations: Optional[jnp.ndarray]      # (P, B, C) perturbed logits or None


class LossEvaluation(NamedTuple):
    loss: jnp.ndarray
    objective_loss: jnp.ndarray
    perturb_loss: jnp.ndarray


# ----------------------------------------------------------------------------
# Kernel
# ----------------------------------------------------------------------------
def _loss_kernel(batch_size, n_pert, needs_mask, *refs):
    """Grid = (n_batch_tiles, n_sets).

    refs (n_pert > 0): fwd_ref (bt,C), pert_ref (1,bt,C), labels_ref (bt,1) i32,
                       out_ref (1,1,8,128) f32  (partial CE row-sum, scalar broadcast).
    refs (n_pert == 0): same without pert_ref.
    """
    if n_pert > 0:
        fwd_ref, pert_ref, labels_ref, out_ref = refs
    else:
        fwd_ref, labels_ref, out_ref = refs
        pert_ref = None

    i = pl.program_id(0)            # batch-tile index
    s = pl.program_id(1)            # set index: 0 = forward_out, 1..P = perturbations

    bt = fwd_ref.shape[0]
    labels = labels_ref[...]        # (bt, 1) int32; assumed in [0, C)

    if needs_mask:
        # Ragged last batch tile: mask rows that fall past the true batch size.
        row = jax.lax.broadcasted_iota(jnp.int32, (bt, 1), 0) + i * bt
        valid = row < batch_size                             # (bt, 1) bool
    else:
        valid = None

    def ce_tile_sum(logits):
        # Sum over this batch tile of (logsumexp(x) - x[label]); the mean over the
        # batch is taken in the JAX wrapper.
        x = logits                                           # native dtype (bf16/f32)
        if valid is not None:
            # Zero padded rows BEFORE any arithmetic so stale buffer NaNs can't leak.
            x = jnp.where(valid, x, jnp.zeros_like(x))
        # max and label masked-select are exact in the native dtype (bf16 VPU on
        # v6e/v7x); only the exp/logsumexp accumulation runs in f32.
        m = jnp.max(x, axis=-1, keepdims=True)               # (bt, 1) native dtype
        cls = jax.lax.broadcasted_iota(jnp.int32, x.shape, 1)
        label_logit = jnp.sum(jnp.where(cls == labels, x, jnp.zeros_like(x)),
                              axis=-1, keepdims=True).astype(jnp.float32)
        x32 = x.astype(jnp.float32)
        m32 = m.astype(jnp.float32)
        lse = m32 + jnp.log(jnp.sum(jnp.exp(x32 - m32), axis=-1, keepdims=True))
        per_row = lse - label_logit                          # (bt, 1) f32
        if valid is not None:
            per_row = jnp.where(valid, per_row, 0.0)
        return jnp.sum(per_row)                              # scalar f32

    def write_partial(val):
        # Lane-dense (8,128) output tile; only element [0,0] is consumed by the
        # wrapper, but a full tile keeps the store unmasked and the BlockSpec legal.
        out_ref[0, 0] = jnp.zeros((8, 128), jnp.float32) + val

    @pl.when(s == 0)
    def _():
        write_partial(ce_tile_sum(fwd_ref[...]))

    if n_pert > 0:
        @pl.when(s > 0)
        def _():
            write_partial(ce_tile_sum(pert_ref[0]))


# ----------------------------------------------------------------------------
# VMEM accounting / tile sizing
# ----------------------------------------------------------------------------
def _vmem_capacity_bytes():
    try:
        return int(pltpu.get_tpu_info().vmem_capacity_bytes)
    except Exception:
        return 64 * 1024 * 1024        # conservative fallback (v7x per-TensorCore VMEM)


def _working_set_per_row(C, it_fwd, it_pert, has_pert):
    # Per batch row: double-buffered fwd tile + double-buffered pert tile
    # (both BlockSpecs are live when perturbations exist) + ~3 full-width f32
    # temporaries from the cast/exp/select chain + labels.
    per_row = 2 * C * it_fwd + 3 * C * 4 + 8
    if has_pert:
        per_row += 2 * C * it_pert
    return per_row


def _pick_batch_tile(B, C, it_fwd, it_pert, has_pert, budget_bytes):
    """Largest multiple-of-8 batch tile whose real working set fits the budget."""
    if B <= 8:
        return B                          # single full-dim block is always legal
    per_row = _working_set_per_row(C, it_fwd, it_pert, has_pert)
    bt_max = max(8, (budget_bytes // per_row) // 8 * 8)
    return int(min(bt_max, (B // 8) * 8))


def _vmem_plan_bytes(bt, C, it_fwd, it_pert, has_pert):
    tile_in = 2 * bt * C * it_fwd + (2 * bt * C * it_pert if has_pert else 0)
    tile_tmp = 3 * bt * C * 4
    small = 2 * bt * 4 + 2 * 8 * 128 * 4
    return tile_in + tile_tmp + small + (2 << 20)            # + slack


# ----------------------------------------------------------------------------
# Wrapper
# ----------------------------------------------------------------------------
def loss_forward(model_outputs: ModelOutputs, labels: jnp.ndarray,
                 runner_config: dict) -> LossEvaluation:
    fwd = model_outputs.forward_out
    pert = model_outputs.perturbations
    B, C = fwd.shape
    n_pert = 0 if pert is None else int(pert.shape[0])
    n_sets = n_pert + 1
    has_pert = n_pert > 0

    labels_2d = labels.astype(jnp.int32).reshape(B, 1)

    it_fwd = jnp.dtype(fwd.dtype).itemsize
    it_pert = jnp.dtype(pert.dtype).itemsize if has_pert else 0

    # Generation-aware VMEM budget (v7x: 64 MiB physical; v5e/v6e: 128 MiB).
    cap = _vmem_capacity_bytes()
    budget = min((cap * 45) // 100, 48 << 20)
    bt = _pick_batch_tile(B, C, it_fwd, it_pert, has_pert, budget)
    n_bt = -(-B // bt)
    needs_mask = (B % bt) != 0

    plan = _vmem_plan_bytes(bt, C, it_fwd, it_pert, has_pert)
    vmem_limit = int(min(max(plan + plan // 4, 32 << 20), (cap * 9) // 10))

    kernel = functools.partial(_loss_kernel, int(B), n_pert, bool(needs_mask))

    # Set axis is innermost: fwd/labels index_maps are s-independent (one DMA per
    # batch tile); the pert index_map pins to set 0 while s == 0 so every
    # perturbation tile is also fetched exactly once.
    fwd_spec = pl.BlockSpec((bt, C), lambda i, s: (i, 0))
    lab_spec = pl.BlockSpec((bt, 1), lambda i, s: (i, 0))

    in_specs = [fwd_spec]
    args = [fwd]
    if has_pert:
        pert_spec = pl.BlockSpec((1, bt, C),
                                 lambda i, s: (jnp.maximum(s - 1, 0), i, 0))
        in_specs.append(pert_spec)
        args.append(pert)
    in_specs.append(lab_spec)
    args.append(labels_2d)

    out_spec = pl.BlockSpec((1, 1, 8, 128), lambda i, s: (s, i, 0, 0))

    bytes_accessed = (B * C * it_fwd + n_pert * B * C * it_pert + B * 4
                      + n_sets * n_bt * 8 * 128 * 4)
    cost = pl.CostEstimate(flops=int(7 * n_sets * B * C),
                           transcendentals=int(n_sets * B * C),
                           bytes_accessed=int(bytes_accessed))

    partials = pl.pallas_call(
        kernel,
        out_shape=jax.ShapeDtypeStruct((n_sets, n_bt, 8, 128), jnp.float32),
        grid=(n_bt, n_sets),
        in_specs=in_specs,
        out_specs=out_spec,
        compiler_params=pltpu.CompilerParams(
            dimension_semantics=("parallel", "parallel"),
            vmem_limit_bytes=vmem_limit),
        cost_estimate=cost,
    )(*args)

    # Scalar combine in the wrapper (a handful of scalars) -> keeps the grid
    # embarrassingly parallel inside the kernel.
    ce_sums = jnp.sum(partials[:, :, 0, 0], axis=1)          # (n_sets,) row-sum per set
    inv_b = jnp.float32(1.0 / float(B))
    objective = ce_sums[0] * inv_b
    if has_pert:
        perturb = jnp.mean(jnp.abs(ce_sums[1:] * inv_b - objective))
    else:
        perturb = jnp.float32(0.0)
    loss = (jnp.float32(runner_config['loss_weight']) * objective
            + jnp.float32(runner_config['perturb_loss_mult']) * perturb)
    return LossEvaluation(loss=loss, objective_loss=objective, perturb_loss=perturb)


# ---- plain-JAX reference for correctness checks -----------------------------
def _ce_ref(logits, labels):
    logp = jax.nn.log_softmax(logits.astype(jnp.float32), axis=-1)
    return -jnp.mean(jnp.take_along_axis(logp, labels[:, None], axis=-1))


def _loss_ref(model_outputs, labels, cfg):
    obj = _ce_ref(model_outputs.forward_out, labels)
    if model_outputs.perturbations is not None:
        pert = jnp.mean(jnp.stack(
            [jnp.abs(_ce_ref(p, labels) - obj) for p in model_outputs.perturbations]))
    else:
        pert = jnp.float32(0.0)
    return cfg['loss_weight'] * obj + cfg['perturb_loss_mult'] * pert, obj, pert


if __name__ == "__main__":
    key = jax.random.PRNGKey(0)
    runner_config = {'loss_weight': 1.0, 'perturb_loss_mult': 0.5}

    # --- test 1: aligned shapes, f32 logits ----------------------------------
    B, C, P = 8, 128, 3
    k1, k2, k3, k4, k5 = jax.random.split(key, 5)
    forward_out = jax.random.normal(k1, (B, C), jnp.float32)
    perturbations = forward_out[None] + 0.1 * jax.random.normal(k2, (P, B, C), jnp.float32)
    labels = jax.random.randint(k3, (B,), 0, C)

    outputs = ModelOutputs(forward_out=forward_out, perturbations=perturbations)
    result = loss_forward(outputs, labels, runner_config)
    jax.block_until_ready(result.loss)

    ref_loss, ref_obj, ref_pert = _loss_ref(outputs, labels, runner_config)
    assert jnp.allclose(result.loss, ref_loss, atol=1e-4, rtol=1e-4)
    assert jnp.allclose(result.objective_loss, ref_obj, atol=1e-4, rtol=1e-4)
    assert jnp.allclose(result.perturb_loss, ref_pert, atol=1e-4, rtol=1e-4)

    # --- test 2: perturbations=None path --------------------------------------
    result_none = loss_forward(ModelOutputs(forward_out, None), labels, runner_config)
    jax.block_until_ready(result_none.loss)
    assert jnp.allclose(result_none.objective_loss, ref_obj, atol=1e-4, rtol=1e-4)
    assert jnp.allclose(result_none.perturb_loss, 0.0)
    assert jnp.allclose(result_none.loss,
                        runner_config['loss_weight'] * ref_obj, atol=1e-4, rtol=1e-4)

    # --- test 3: non-128-multiple class dim, native bf16 logits in HBM --------
    B2, C2, P2 = 8, 100, 2
    fwd2 = jax.random.normal(k4, (B2, C2), jnp.float32).astype(jnp.bfloat16)
    pert2 = (fwd2.astype(jnp.float32)[None]
             + 0.1 * jax.random.normal(k5, (P2, B2, C2), jnp.float32)).astype(jnp.bfloat16)
    labels2 = jax.random.randint(jax.random.fold_in(key, 7), (B2,), 0, C2)

    outputs2 = ModelOutputs(forward_out=fwd2, perturbations=pert2)
    result2 = loss_forward(outputs2, labels2, runner_config)
    jax.block_until_ready(result2.loss)

    ref2_loss, ref2_obj, ref2_pert = _loss_ref(outputs2, labels2, runner_config)
    assert jnp.allclose(result2.loss, ref2_loss, atol=1e-3, rtol=1e-3)
    assert jnp.allclose(result2.objective_loss, ref2_obj, atol=1e-3, rtol=1e-3)
    assert jnp.allclose(result2.perturb_loss, ref2_pert, atol=1e-3, rtol=1e-3)

    # --- test 4: ragged batch (B not a multiple of the tile), masked last tile -
    B3, C3, P3 = 12, 100, 2
    k6, k7, k8 = jax.random.split(jax.random.fold_in(key, 11), 3)
    fwd3 = jax.random.normal(k6, (B3, C3), jnp.float32)
    pert3 = fwd3[None] + 0.1 * jax.random.normal(k7, (P3, B3, C3), jnp.float32)
    labels3 = jax.random.randint(k8, (B3,), 0, C3)

    outputs3 = ModelOutputs(forward_out=fwd3, perturbations=pert3)
    result3 = loss_forward(outputs3, labels3, runner_config)
    jax.block_until_ready(result3.loss)

    ref3_loss, ref3_obj, ref3_pert = _loss_ref(outputs3, labels3, runner_config)
    assert jnp.allclose(result3.loss, ref3_loss, atol=1e-4, rtol=1e-4)
    assert jnp.allclose(result3.objective_loss, ref3_obj, atol=1e-4, rtol=1e-4)
    assert jnp.allclose(result3.perturb_loss, ref3_pert, atol=1e-4, rtol=1e-4)

    print("KERNEL_OK")
</pallas_src>

<mosaic_0001>
module attributes {stable_mosaic.version = 11 : i64} {
  func.func @_loss_kernel(%arg0: i32, %arg1: i32, %arg2: memref<8x128xf32, #tpu.memory_space<vmem>>, %arg3: memref<1x8x128xf32, #tpu.memory_space<vmem>>, %arg4: memref<8x1xi32, #tpu.memory_space<vmem>>, %arg5: memref<1x1x8x128xf32, #tpu.memory_space<vmem>>) attributes {dimension_semantics = [#tpu.dimension_semantics<parallel>, #tpu.dimension_semantics<parallel>], iteration_bounds = array<i64: 1, 4>, scalar_prefetch = 0 : i64, scratch_operands = 0 : i64, tpu.core_type = #tpu.core_type<tc>, window_params = [{transform_indices = @transform_0, window_bounds = array<i64: 8, 128>}, {transform_indices = @transform_1, window_bounds = array<i64: 1, 8, 128>}, {transform_indices = @transform_2, window_bounds = array<i64: 8, 1>}, {transform_indices = @transform_3, window_bounds = array<i64: 1, 1, 8, 128>}]} {
    %c0 = arith.constant 0 : index
    %c0_0 = arith.constant 0 : index
    %0 = vector.load %arg4[%c0, %c0_0] : memref<8x1xi32, #tpu.memory_space<vmem>>, vector<8x1xi32>
    %c0_i32 = arith.constant 0 : i32
    %1 = arith.cmpi eq, %arg1, %c0_i32 : i32
    %2 = arith.extui %1 : i1 to i32
    %c0_i32_1 = arith.constant 0 : i32
    %3 = arith.cmpi ne, %2, %c0_i32_1 : i32
    scf.if %3 {
      %c0_4 = arith.constant 0 : index
      %c0_5 = arith.constant 0 : index
      %7 = vector.load %arg2[%c0_4, %c0_5] : memref<8x128xf32, #tpu.memory_space<vmem>>, vector<8x128xf32>
      %cst = arith.constant dense<0xFF800000> : vector<8xf32>
      %8 = vector.multi_reduction <maximumf>, %7, %cst [1] : vector<8x128xf32> to vector<8xf32>
      %9 = vector.shape_cast %8 : vector<8xf32> to vector<8x1xf32>
      %10 = tpu.iota {dimensions = array<i32: 1>} : vector<8x128xi32>
      %11 = vector.broadcast %0 : vector<8x1xi32> to vector<8x128xi32>
      %12 = arith.cmpi eq, %10, %11 : vector<8x128xi32>
      %cst_6 = arith.constant 0.000000e+00 : f32
      %13 = vector.broadcast %cst_6 : f32 to vector<8x128xf32>
      %14 = arith.select %12, %7, %13 : vector<8x128xi1>, vector<8x128xf32>
      %cst_7 = arith.constant dense<0.000000e+00> : vector<8xf32>
      %15 = vector.multi_reduction <add>, %14, %cst_7 [1] : vector<8x128xf32> to vector<8xf32>
      %16 = vector.shape_cast %15 : vector<8xf32> to vector<8x1xf32>
      %17 = vector.broadcast %9 : vector<8x1xf32> to vector<8x128xf32>
      %18 = arith.subf %7, %17 : vector<8x128xf32>
      %19 = math.exp %18 : vector<8x128xf32>
      %cst_8 = arith.constant dense<0.000000e+00> : vector<8xf32>
      %20 = vector.multi_reduction <add>, %19, %cst_8 [1] : vector<8x128xf32> to vector<8xf32>
      %21 = vector.shape_cast %20 : vector<8xf32> to vector<8x1xf32>
      %22 = math.log %21 : vector<8x1xf32>
      %23 = arith.addf %9, %22 : vector<8x1xf32>
      %24 = arith.subf %23, %16 : vector<8x1xf32>
      %25 = vector.shape_cast %24 : vector<8x1xf32> to vector<1x8x1xf32>
      %cst_9 = arith.constant dense<0.000000e+00> : vector<1xf32>
      %26 = vector.multi_reduction <add>, %25, %cst_9 [1, 2] : vector<1x8x1xf32> to vector<1xf32>
      %27 = vector.shape_cast %26 : vector<1xf32> to vector<1x1x1xf32>
      %28 = vector.extract %27[0, 0, 0] : f32 from vector<1x1x1xf32>
      %cst_10 = arith.constant 0.000000e+00 : f32
      %29 = vector.broadcast %cst_10 : f32 to vector<8x128xf32>
      %30 = vector.broadcast %28 : f32 to vector<8x128xf32>
      %31 = arith.addf %29, %30 : vector<8x128xf32>
      %c0_11 = arith.constant 0 : index
      %c0_12 = arith.constant 0 : index
      %c0_13 = arith.constant 0 : index
      %c0_14 = arith.constant 0 : index
      %32 = vector.load %arg5[%c0_11, %c0_12, %c0_13, %c0_14] : memref<1x1x8x128xf32, #tpu.memory_space<vmem>>, vector<1x1x8x128xf32>
      %33 = vector.shape_cast %32 : vector<1x1x8x128xf32> to vector<8x128xf32>
      %34 = vector.shape_cast %31 : vector<8x128xf32> to vector<1x1x8x128xf32>
      tpu.vector_store %arg5[%c0_11, %c0_12, %c0_13, %c0_14], %34 {strides = array<i32>} : memref<1x1x8x128xf32, #tpu.memory_space<vmem>>, vector<1x1x8x128xf32>,
    } else {
    }
    %c0_i32_2 = arith.constant 0 : i32
    %4 = arith.cmpi sgt, %arg1, %c0_i32_2 : i32
    %5 = arith.extui %4 : i1 to i32
    %c0_i32_3 = arith.constant 0 : i32
    %6 = arith.cmpi ne, %5, %c0_i32_3 : i32
    scf.if %6 {
      %c0_4 = arith.constant 0 : index
      %c0_5 = arith.constant 0 : index
      %c0_6 = arith.constant 0 : index
      %7 = vector.load %arg3[%c0_4, %c0_5, %c0_6] : memref<1x8x128xf32, #tpu.memory_space<vmem>>, vector<1x8x128xf32>
      %8 = vector.shape_cast %7 : vector<1x8x128xf32> to vector<8x128xf32>
      %cst = arith.constant dense<0xFF800000> : vector<8xf32>
      %9 = vector.multi_reduction <maximumf>, %8, %cst [1] : vector<8x128xf32> to vector<8xf32>
      %10 = vector.shape_cast %9 : vector<8xf32> to vector<8x1xf32>
      %11 = tpu.iota {dimensions = array<i32: 1>} : vector<8x128xi32>
      %12 = vector.broadcast %0 : vector<8x1xi32> to vector<8x128xi32>
      %13 = arith.cmpi eq, %11, %12 : vector<8x128xi32>
      %cst_7 = arith.constant 0.000000e+00 : f32
      %14 = vector.broadcast %cst_7 : f32 to vector<8x128xf32>
      %15 = arith.select %13, %8, %14 : vector<8x128xi1>, vector<8x128xf32>
      %cst_8 = arith.constant dense<0.000000e+00> : vector<8xf32>
      %16 = vector.multi_reduction <add>, %15, %cst_8 [1] : vector<8x128xf32> to vector<8xf32>
      %17 = vector.shape_cast %16 : vector<8xf32> to vector<8x1xf32>
      %18 = vector.broadcast %10 : vector<8x1xf32> to vector<8x128xf32>
      %19 = arith.subf %8, %18 : vector<8x128xf32>
      %20 = math.exp %19 : vector<8x128xf32>
      %cst_9 = arith.constant dense<0.000000e+00> : vector<8xf32>
      %21 = vector.multi_reduction <add>, %20, %cst_9 [1] : vector<8x128xf32> to vector<8xf32>
      %22 = vector.shape_cast %21 : vector<8xf32> to vector<8x1xf32>
      %23 = math.log %22 : vector<8x1xf32>
      %24 = arith.addf %10, %23 : vector<8x1xf32>
      %25 = arith.subf %24, %17 : vector<8x1xf32>
      %26 = vector.shape_cast %25 : vector<8x1xf32> to vector<1x8x1xf32>
      %cst_10 = arith.constant dense<0.000000e+00> : vector<1xf32>
      %27 = vector.multi_reduction <add>, %26, %cst_10 [1, 2] : vector<1x8x1xf32> to vector<1xf32>
      %28 = vector.shape_cast %27 : vector<1xf32> to vector<1x1x1xf32>
      %29 = vector.extract %28[0, 0, 0] : f32 from vector<1x1x1xf32>
      %cst_11 = arith.constant 0.000000e+00 : f32
      %30 = vector.broadcast %cst_11 : f32 to vector<8x128xf32>
      %31 = vector.broadcast %29 : f32 to vector<8x128xf32>
      %32 = arith.addf %30, %31 : vector<8x128xf32>
      %c0_12 = arith.constant 0 : index
      %c0_13 = arith.constant 0 : index
      %c0_14 = arith.constant 0 : index
      %c0_15 = arith.constant 0 : index
      %33 = vector.load %arg5[%c0_12, %c0_13, %c0_14, %c0_15] : memref<1x1x8x128xf32, #tpu.memory_space<vmem>>, vector<1x1x8x128xf32>
      %34 = vector.shape_cast %33 : vector<1x1x8x128xf32> to vector<8x128xf32>
      %35 = vector.shape_cast %32 : vector<8x128xf32> to vector<1x1x8x128xf32>
      tpu.vector_store %arg5[%c0_12, %c0_13, %c0_14, %c0_15], %35 {strides = array<i32>} : memref<1x1x8x128xf32, #tpu.memory_space<vmem>>, vector<1x1x8x128xf32>,
    } else {
    }
    return
  }
  func.func @transform_0(%arg0: i32, %arg1: i32) -> (i32, i32) {
    %c0_i32 = arith.constant 0 : i32
    %c0_i32_0 = arith.constant 0 : i32
    return %arg0, %c0_i32 : i32, i32
  }
  func.func @transform_1(%arg0: i32, %arg1: i32) -> (i32, i32, i32) {
    %c1_i32 = arith.constant 1 : i32
    %0 = arith.subi %arg1, %c1_i32 : i32
    %c0_i32 = arith.constant 0 : i32
    %1 = arith.maxsi %0, %c0_i32 : i32
    %c0_i32_0 = arith.constant 0 : i32
    %c0_i32_1 = arith.constant 0 : i32
    return %1, %arg0, %c0_i32_0 : i32, i32, i32
  }
  func.func @transform_2(%arg0: i32, %arg1: i32) -> (i32, i32) {
    %c0_i32 = arith.constant 0 : i32
    %c0_i32_0 = arith.constant 0 : i32
    return %arg0, %c0_i32 : i32, i32
  }
  func.func @transform_3(%arg0: i32, %arg1: i32) -> (i32, i32, i32, i32) {
    %c0_i32 = arith.constant 0 : i32
    %c0_i32_0 = arith.constant 0 : i32
    %c0_i32_1 = arith.constant 0 : i32
    return %arg1, %arg0, %c0_i32, %c0_i32_0 : i32, i32, i32, i32
  }
}

</mosaic_0001>

<bundles_post_ra>
// kernel: tpu_custom_call.1
= control target key start
LH: loop header
LB: loop body
LE: loop exit
PB: predicated region body
PF: predicated region fallthrough
CT: control target
= control target key end

     0   :  { %8 = vsyncpa [#allocation3], 0  ;;  %s905_s0 = inlined_call_operand.vmem [shape: f32[8,128], index: 0, kind: input, shape index: {}]   ;;  %s906_s1 = inlined_call_operand.hbm [shape: f32[3,8,128], index: 1, kind: input, shape index: {}]   ;;  %s907_s2 = inlined_call_operand.vmem [shape: s32[8,1], index: 2, kind: input, shape index: {}]   ;;  %s908_s3 = inlined_call_operand.hbm [shape: f32[4,1,8,128], index: 3, kind: output, shape index: {}]  }
   0x1   :  { %10 = vsyncpa [#allocation3 + $0x1], 0 }
   0x2   :  { %11 = vsyncpa [#allocation4], 0 }
   0x3   :  { %13 = vsyncpa [#allocation4 + $0x1], 0  ;;  %s739_s12 = smov 0   ;;  %s741_s13 = smov 0  }
   0x4   :  { %s743_s14 = smov 0   ;;  %s745_s15 = smov 0  }
   0x5   :  { %s747_s16 = smov 0   ;;  %s749_s17 = smov 0  }
   0x6   :  { %s751_s18 = smov 0   ;;  %s753_s19 = smov 0  }
   0x7   :  { %s755_s20 = smov 0  }
   0x8 LB: > { %s457_s21 = sadd.s32 4294967295, %s715_s20   ;;  %s458_s22 = sadd.s32 4294967294, %s715_s20   ;;  %s715_s20 = sphi %s755_s20, %s19_s20   ;;  %s711_s19 = sphi %s753_s19, %s920_s19   ;;  %s707_s18 = sphi %s751_s18, %s919_s18   ;;  %s703_s17 = sphi %s749_s17, %s918_s17   ;;  %s699_s16 = sphi %s747_s16, %s917_s16   ;;  %s695_s15 = sphi %s745_s15, %s916_s15   ;;  %s691_s14 = sphi %s743_s14, %s915_s14   ;;  %s687_s13 = sphi %s741_s13, %s914_s13   ;;  %s683_s12 = sphi %s739_s12, %s913_s12  }
   0x9   : > { %s28_s23 = sadd.s32 1, %s711_s19  ;;  %s459_s24 = sadd.s32 4294967295, %s711_s19 }
   0xa   : > { %p29_p0 = scmp.ge.s32.totalorder %s28_s23, 4  ;;  %p62_p1 = scmp.gt.s32.totalorder %s459_s24, 0 }
   0xb   : > { %s72_s25 = sadd.s32 1, %s703_s17  ;;  %p79_p2 = scmp.ne.s32.totalorder %s703_s17, %s699_s16 }
   0xc   : > { %s922_s23 = smov (%p29_p0, %s28_s23), 0  ;;  %s924_s24 = smov (!%p62_p1, %s459_s24), 0 }
   0xd   : > { %s460_s26 = sadd.s32 4294967295, %s922_s23  ;;  %p80_p3 = scmp.eq.s32.totalorder %s715_s20, 0 }
   0xe   : > { %p65_p4 = scmp.gt.s32.totalorder %s460_s26, 0  ;;  %p85_p5 = scmp.ne.s32.totalorder %s699_s16, %s695_s15 }
   0xf   : > { %p794_p6 = por %p80_p3, %p79_p2  ;;  %p86_p7 = scmp.eq.s32.totalorder %s457_s21, 0 }
  0x10   : > { %s926_s26 = smov (!%p65_p4, %s460_s26), 0  ;;  %s121_s29 = ssub.s32 %s711_s19, %s922_s23 }
  0x11   : > { %p798_p8 = por %p86_p7, %p85_p5  ;;  %s67_s30 = ssub.s32 %s924_s24, %s926_s26 }
  0x12   : > { %p124_p9 = scmp.eq.s32.totalorder %s121_s29, 0  ;;  %p70_p10 = scmp.eq.s32.totalorder %s67_s30, 0 }
  0x13   : > { %s126_s4 = sadd.s32 1, %s691_s14  ;;  %p136_p11 = scmp.ne.s32.totalorder %s691_s14, %s687_s13 }
  0x14   : > { %s806_s5 = scalar_select %p124_p9, %s691_s14, %s126_s4  }
  0x15   : > { %s809_s6 = scalar_select %p70_p10, %s703_s17, %s72_s25  }
  0x16   : > { %p137_p12 = scmp.eq.s32.totalorder %s457_s21, 3  ;;  %p142_p13 = scmp.ne.s32.totalorder %s687_s13, %s683_s12 }
  0x17   : > { %p143_p0 = scmp.eq.s32.totalorder %s458_s22, 3  ;;  %p493_p3 = scmp.lt.s32.totalorder %s715_s20, 4 }
  0x18   : > { %p815_p1 = por %p137_p12, %p136_p11  ;;  %s177_s9 = sand.u32 1, %s703_s17  }
  0x19   : > { %p819_p2 = por %p143_p0, %p142_p13  ;;  %s467_s10 = sshll.u32 %s924_s24, 3 }
  0x1a   : > { %s465_s11 = sshll.u32 %s177_s9, 3  ;;  %s189_s21 = scalar_lea.hbm %s906_s1, %s467_s10 }
  0x1b   : > { %s191_s26 = sshll.u32 %s189_s21, 4  ;;  %s181_s29 = scalar_lea.vmem [#allocation2], %s465_s11  ;;  %s192_s26 = int_to_ptr.hbm [resolvable:$true] %s191_s26 }
  0x1c   : > { %s193_s30 = sshll.u32 %s181_s29, 4  ;;  %p486_p4 = pnand %p493_p3, %p794_p6  ;;  %s194_s30 = int_to_ptr.vmem [resolvable:$true] %s193_s30 }
  0x1d   : > { %p468_p5 = scmp.ge.s32.totalorder %s715_s20, 1  ;;  %p198_p7 = scmp.lt.s32.totalorder %s715_s20, 5 }
  0x1e   : > { %s178_s22 = scalar_lea.sflag [#allocation3], %s177_s9 }
  0x1f   : > { %488 = dma.hbm_to_vmem [thread:$0]  (!%p486_p4), %s192_s26, 128, %s194_s30, %s178_s22  }
  0x20   : > { %p199_p9 = pnand %p468_p5, %p198_p7 }
  0x21   : > { %s204_s24 = sand.u32 (!%p199_p9), 1, %s699_s16  }
  0x22   : > { %202 = sbr.rel (%p199_p9) target bundleno = 945 (0x3b1), region = 32  ;;  %s833_s4 = sshll.u32 (!%p199_p9), %s204_s24, 3 }
  0x23   : > { %s205_s10 = scalar_lea.sflag (!%p199_p9), [#allocation3], %s204_s24  ;;  %s208_s15 = scalar_lea.vmem (!%p199_p9), [#allocation2], %s833_s4 }
  0x27   : > { %674 = dma.done.wait (%p798_p8), %s205_s10, 128  }
  0x28   : > { %676 = vsyncadd (%p798_p8), %s205_s10, 4294967168  ;;  %s237_s27 = sand.u32 1, %s687_s13   ;;  %v251_v0 = vld [vmem:[%s907_s2] sm:$0xff]  ;;  %p471_p6 = scmp.ne.s32.totalorder %s707_s18, 0 }
  0x29   : > { %s470_s9 = sshll.u32 %s237_s27, 3 }
  0x2a   : > { %s846_s21 = scalar_lea.vmem [#allocation5], %s470_s9  ;;  %255 = sbr.rel (%p471_p6) target bundleno = 485 (0x1e5), region = 40 }
  0x2f   : > { %v256_v1 = vld [vmem:[%s905_s0] sm:$0xff]  ;;  %v717_v2 = vmov 0   ;;  %v259_v7 = vlaneseq  ;;  %vm277_vm1 = vcmask 7168  }
  0x30   : > { %257 = vmax.xlane.f32.xlu0 %v256_v1 }
  0x31   : > { %569 = vset.pattern.permute.xlu0 %v717_v2  ;;  %v260_v8 = vand.u32 127, %v259_v7 }
  0x44   : > { %262 = vperm.xlu0 %569, %v251_v0  }
  0xa3   : > { %v258_v3 = vpop.xlane.xlu0 %257 }
  0xa4   : > { %v268_v4 = vsub.f32 %v256_v1, %v258_v3 }
  0xa6   : > { %v269_v5 = vmul.f32 1.442695, %v268_v4 }
  0xa8   : > { %570 = vpow2.f32 %v269_v5 }
  0xae   : > { %v571_v6 = vpop.eup %570 }
  0xaf   : > { %271 = vadd.xlane.f32.xlu1 %v571_v6 }
  0xb6   : > { %v263_v9 = vpop.permute.xlu0 %262 }
  0xb7   : > { %vm264_vm0 = vcmp.eq.s32.totalorder %v260_v8, %v263_v9 }
  0xb8   : > { %v265_v10 = vsel %vm264_vm0, %v256_v1, 0.0 }
  0xb9   : > { %266 = vadd.xlane.f32.xlu1 %v265_v10 }
 0x122   : > { %v272_v11 = vpop.xlane.xlu1 %271 }
 0x123   : > { %572 = vlog2.f32 %v272_v11 }
 0x129   : > { %v573_v12 = vpop.eup %572 }
 0x12a   : > { %v274_v13 = vmul.f32 0.6931472, %v573_v12 }
 0x12c   : > { %v275_v14 = vadd.f32 %v274_v13, %v258_v3  ;;  %v267_v15 = vpop.xlane.xlu1 %266 }
 0x12e   : > { %v276_v16 = vsub.f32 %v275_v14, %v267_v15 }
 0x130   : > { %v278_v17 = vsel %vm277_vm1, %v276_v16, 0.0 }
 0x131   : > { %279 = vadd.xlane.f32.xlu2 %v278_v17 }
 0x1a4   : > { %v280_v18 = vpop.xlane.xlu2 %279 }
 0x1a5   : > { %v281_v19 = vrot.slane %v280_v18, 4 }
 0x1a7   : > { %v282_v20 = vadd.f32 %v281_v19, %v280_v18 }
 0x1a9   : > { %v283_v21 = vrot.slane %v282_v20, 2 }
 0x1ab   : > { %v284_v22 = vadd.f32 %v283_v21, %v282_v20 }
 0x1ad   : > { %v285_v23 = vrot.slane %v284_v22, 1 }
 0x1af   : > { %v286_v24 = vadd.f32 %v285_v23, %v284_v22 }
 0x1b1   : > { %477 = vpush %v286_v24 }
 0x1e2   : > { %s478_s28 = spop %477 }
 0x1e3   : > { %v288_v25 = vstv %s478_s28 }
 0x1e4   : > { %290 = vst [vmem:[%s846_s21] sm:$0xff] %v288_v25 }
 0x1e5 PF: > { %p472_p8 = scmp.le.s32.totalorder %s707_s18, 0 }
 0x1e7   : > { %294 = sbr.rel (%p472_p8) target bundleno = 930 (0x3a2), region = 44 }
 0x1ec   : > { %v295_v26 = vld [vmem:[%s208_s15] sm:$0xff]  ;;  %v718_v27 = vmov 0   ;;  %v298_v32 = vlaneseq  ;;  %vm316_vm3 = vcmask 7168  }
 0x1ed   : > { %296 = vmax.xlane.f32.xlu0 %v295_v26 }
 0x1ee   : > { %574 = vset.pattern.permute.xlu0 %v718_v27  ;;  %v299_v33 = vand.u32 127, %v298_v32 }
 0x201   : > { %301 = vperm.xlu0 %574, %v251_v0  }
 0x260   : > { %v297_v28 = vpop.xlane.xlu0 %296 }
 0x261   : > { %v307_v29 = vsub.f32 %v295_v26, %v297_v28 }
 0x263   : > { %v308_v30 = vmul.f32 1.442695, %v307_v29 }
 0x265   : > { %575 = vpow2.f32 %v308_v30 }
 0x26b   : > { %v576_v31 = vpop.eup %575 }
 0x26c   : > { %310 = vadd.xlane.f32.xlu1 %v576_v31 }
 0x273   : > { %v302_v34 = vpop.permute.xlu0 %301 }
 0x274   : > { %vm303_vm2 = vcmp.eq.s32.totalorder %v299_v33, %v302_v34 }
 0x275   : > { %v304_v35 = vsel %vm303_vm2, %v295_v26, 0.0 }
 0x276   : > { %305 = vadd.xlane.f32.xlu1 %v304_v35 }
 0x2df   : > { %v311_v36 = vpop.xlane.xlu1 %310 }
 0x2e0   : > { %577 = vlog2.f32 %v311_v36 }
 0x2e6   : > { %v578_v37 = vpop.eup %577 }
 0x2e7   : > { %v313_v38 = vmul.f32 0.6931472, %v578_v37 }
 0x2e9   : > { %v314_v39 = vadd.f32 %v313_v38, %v297_v28  ;;  %v306_v40 = vpop.xlane.xlu1 %305 }
 0x2eb   : > { %v315_v41 = vsub.f32 %v314_v39, %v306_v40 }
 0x2ed   : > { %v317_v42 = vsel %vm316_vm3, %v315_v41, 0.0 }
 0x2ee   : > { %318 = vadd.xlane.f32.xlu2 %v317_v42 }
 0x361   : > { %v319_v43 = vpop.xlane.xlu2 %318 }
 0x362   : > { %v320_v44 = vrot.slane %v319_v43, 4 }
 0x364   : > { %v321_v45 = vadd.f32 %v320_v44, %v319_v43 }
 0x366   : > { %v322_v46 = vrot.slane %v321_v45, 2 }
 0x368   : > { %v323_v47 = vadd.f32 %v322_v46, %v321_v45 }
 0x36a   : > { %v324_v48 = vrot.slane %v323_v47, 1 }
 0x36c   : > { %v325_v49 = vadd.f32 %v324_v48, %v323_v47 }
 0x36e   : > { %479 = vpush %v325_v49 }
 0x39f   : > { %s480_s30 = spop %479 }
 0x3a0   : > { %v327_v50 = vstv %s480_s30 }
 0x3a1   : > { %329 = vst [vmem:[%s846_s21] sm:$0xff] %v327_v50 }
 0x3a2 PF: > { %s474_s22 = sshll.u32 %s707_s18, 3  ;;  %s344_s15 = sshll.u32 %s846_s21, 4  ;;  %s345_s15 = int_to_ptr.vmem [resolvable:$true] %s344_s15 }
 0x3a3   : > { %s342_s10 = scalar_lea.hbm %s908_s3, %s474_s22  ;;  %s331_s11 = scalar_lea.sflag [#allocation4], %s237_s27 }
 0x3a4   : > { %s346_s9 = sshll.u32 %s342_s10, 4  ;;  %s629_s18 = scalar_lea.hbm %s908_s3, 32  ;;  %s347_s9 = int_to_ptr.hbm [resolvable:$true] %s346_s9 }
 0x3a5   : > { %s623_s25 = sshra.s32 %s347_s9, 4  ;;  %s624_s25 = int_to_ptr.hbm [resolvable:$true] %s623_s25 }
 0x3a6   : > { %s625_s26 = scalar_lea.hbm %s624_s25, 8  ;;  %p630_p13 = scmp.lt.s32.totalorder %s624_s25, %s908_s3 }
 0x3a7   : > { %p626_p10 = scmp.ne.s32.totalorder %s624_s25, %s625_s26  ;;  %p631_p0 = scmp.lt.s32.totalorder %s629_s18, %s625_s26 }
 0x3a9   : > { %p627_p11 = pnand %p626_p10, %p815_p1  ;;  %p632_p3 = por %p631_p0, %p630_p13 }
 0x3ab   : > { %p628_p12 = pneg %p627_p11 }
 0x3ad   : > { %p633_p4 = pnand %p632_p3, %p628_p12 }
 0x3af   : > { %636 = shalt.err (!%p633_p4)
}
 0x3b0   : > { %483 = dma.vmem_to_hbm [thread:$0]  (%p815_p1), %s345_s15, 128, %s347_s9, %s331_s11  }
 0x3b1 PF: > { %p494_p5 = scmp.ge.s32.totalorder %s715_s20, 2  ;;  %s358_s27 = sand.u32 1, %s683_s12  }
 0x3b2   : > { %s359_s21 = scalar_lea.sflag [#allocation4], %s358_s27 }
 0x3b3   : > { %p490_p7 = pnand %p494_p5, %p819_p2 }
 0x3b5   : > { %p491_p9 = pneg %p490_p7 }
 0x3b7   : > { %678 = dma.done.wait (%p491_p9), %s359_s21, 128  }
 0x3b8   : > { %680 = vsyncadd (%p491_p9), %s359_s21, 4294967168  ;;  %s19_s20 = sadd.s32 1, %s715_s20   ;;  %s913_s12 = smov %s687_s13 }
 0x3b9   : > { %p16_p6 = scmp.ge.s32.totalorder %s19_s20, 6   ;;  %s914_s13 = smov %s691_s14 }
 0x3ba   : > { %s915_s14 = smov %s806_s5  ;;  %s916_s15 = smov %s699_s16 }
 0x3bb   : > { %s917_s16 = smov %s703_s17  ;;  %s918_s17 = smov %s809_s6 }
 0x3bc   : > { %s919_s18 = smov %s711_s19  ;;  %s920_s19 = smov %s922_s23 }
 0x3bd   :  { %18 = sbr.rel (!%p16_p6) target bundleno = 8 (0x8), region = 91 }
 0x3c2   :  { %365 = vsyncpa [#allocation3], 1 }
 0x3c3   :  { %367 = vsyncpa [#allocation3 + $0x1], 1 }
 0x3c4   :  { %368 = vsyncpa [#allocation4], 1 }
 0x3c5   :  { %370 = vsyncpa [#allocation4 + $0x1], 1 }

</bundles_post_ra>
